<compile_context>
chip_gen: v7x
topology: tpu7x:2x2x1
jax: 0.10.0
libtpu: 0.0.40
codegen_flags: <defaults>
</compile_context>

<pallas_src>
import functools

import jax
import jax.numpy as jnp
from jax.experimental import pallas as pl
from jax.experimental.pallas import tpu as pltpu

LOG_STD_MIN = -20.0
LOG_STD_MAX = 2.0


def _round_up(x, m):
    return -(-x // m) * m


def _policy_kernel(state_ref, w1_ref, b1_ref, w2_ref, b2_ref, wh_ref, bh_ref,
                   out_ref, *, head_pad):
    compute_dtype = w1_ref.dtype

    # Hidden layer 1: relu(state @ W1 + b1)   (f32 accumulation on the MXU)
    x = jnp.dot(state_ref[...].astype(compute_dtype), w1_ref[...],
                preferred_element_type=jnp.float32)
    x = jnp.maximum(x + b1_ref[...], 0.0)

    # Hidden layer 2: relu(x @ W2 + b2)
    x = jnp.dot(x.astype(compute_dtype), w2_ref[...],
                preferred_element_type=jnp.float32)
    x = jnp.maximum(x + b2_ref[...], 0.0)
    # TODO(synk): double_hidden_layer=True branch (lin3) not implemented; defaults used.

    # Fused output heads: one matmul producing [mean | pad | log_std | pad]
    # with the mean/log_std split sitting on a 128-lane boundary.
    heads = jnp.dot(x.astype(compute_dtype), wh_ref[...],
                    preferred_element_type=jnp.float32) + bh_ref[...]

    # use_softplus=False path: clamp only the log_std half.  Static, 128-aligned
    # column slices -> unmasked full-vreg stores, no iota/where mask needed.
    out_ref[:, :head_pad] = heads[:, :head_pad].astype(out_ref.dtype)
    out_ref[:, head_pad:] = jnp.clip(
        heads[:, head_pad:], LOG_STD_MIN, LOG_STD_MAX).astype(out_ref.dtype)


def make_policy_forward(params, *, weights_dtype=jnp.float32, tile_b_max=256):
    """Pre-fuse / pre-cast weights once and return a jitted forward(state) fn.

    params: dict with keys w1,b1,w2,b2,wm,bm,ws,bs
            weights are (in, out); biases are (out,)
    forward(state): state (B, input_dim) f32 -> (mean, log_std), each (B, out) f32.
    """
    input_dim, hidden_dim = params["w1"].shape
    out_dim = params["wm"].shape[1]
    head_pad = _round_up(max(out_dim, 1), 128)   # lane-dense head width
    two_head = 2 * head_pad

    # ---- one-time weight preparation (NOT in the per-call hot path) ----------
    w1 = params["w1"].astype(weights_dtype)
    w2 = params["w2"].astype(weights_dtype)
    wh = jnp.zeros((hidden_dim, two_head), jnp.float32)
    wh = wh.at[:, :out_dim].set(params["wm"])
    wh = wh.at[:, head_pad:head_pad + out_dim].set(params["ws"])
    wh = wh.astype(weights_dtype)
    b1 = params["b1"].reshape(1, -1).astype(jnp.float32)
    b2 = params["b2"].reshape(1, -1).astype(jnp.float32)
    bh = jnp.zeros((1, two_head), jnp.float32)
    bh = bh.at[0, :out_dim].set(params["bm"])
    bh = bh.at[0, head_pad:head_pad + out_dim].set(params["bs"])

    prepared = (w1, b1, w2, b2, wh, bh)
    itemsize = jnp.dtype(weights_dtype).itemsize

    try:
        vmem_cap = pltpu.get_tpu_info().vmem_capacity_bytes
    except Exception:
        vmem_cap = 64 << 20   # conservative: v7x per-core VMEM

    @jax.jit
    def _forward(state, w1, b1, w2, b2, wh, bh):
        B = state.shape[0]

        # Batch tile: multiple of 8 sublanes, >=2 grid steps when possible so
        # both v7x TensorCores get work, snapped to a 128-multiple when large
        # for full MXU M-tiles; small tiles also keep the (tile_b, hidden)
        # intermediate out of the spill regime.
        tile_b = max(8, min(tile_b_max, _round_up(pl.cdiv(B, 2), 8)))
        if tile_b >= 128:
            tile_b = (tile_b // 128) * 128
        b_pad = _round_up(B, tile_b)
        xs = state
        if b_pad != B:   # avoid the HBM pad copy when B is already divisible
            xs = jnp.pad(state, ((0, b_pad - B), (0, 0)))
        grid = (b_pad // tile_b,)

        # state/output blocks advance with the grid; weights/biases keep block
        # (0,0) and are single-buffered (index never changes -> one DMA, half
        # the resident VMEM vs the default double buffer).
        state_spec = pl.BlockSpec((tile_b, input_dim), lambda i: (i, 0))
        const = lambda shape: pl.BlockSpec(shape, lambda i: (0, 0),
                                           pipeline_mode=pl.Buffered(1))
        out_spec = pl.BlockSpec((tile_b, two_head), lambda i: (i, 0))

        # VMEM budget: single-buffered weights + biases, double-buffered
        # state/out tiles, plus intermediate activations; cap under physical VMEM.
        weight_bytes = (w1.size + w2.size + wh.size) * itemsize
        bias_bytes = (b1.size + b2.size + bh.size) * 4
        io_bytes = 2 * tile_b * (input_dim + two_head) * 4
        interm_bytes = 3 * tile_b * hidden_dim * 4
        vmem_est = weight_bytes + bias_bytes + io_bytes + interm_bytes
        vmem_limit = int(min(max(2 * vmem_est, 32 << 20), vmem_cap - (8 << 20)))

        flops = 2 * b_pad * (input_dim * hidden_dim
                             + hidden_dim * hidden_dim
                             + hidden_dim * two_head)
        bytes_accessed = (4 * b_pad * input_dim          # state in
                          + 4 * b_pad * two_head         # combined output
                          + weight_bytes + bias_bytes)

        combined = pl.pallas_call(
            functools.partial(_policy_kernel, head_pad=head_pad),
            out_shape=jax.ShapeDtypeStruct((b_pad, two_head), jnp.float32),
            grid=grid,
            in_specs=[
                state_spec,
                const(w1.shape), const(b1.shape),
                const(w2.shape), const(b2.shape),
                const(wh.shape), const(bh.shape),
            ],
            out_specs=out_spec,
            compiler_params=pltpu.CompilerParams(
                # Batch axis fully independent; on v7x, pltpu.CORE_PARALLEL is
                # worth trying here for explicit 2-TC sharding.
                dimension_semantics=("parallel",),
                vmem_limit_bytes=vmem_limit,
            ),
            cost_estimate=pl.CostEstimate(
                flops=flops, transcendentals=0, bytes_accessed=bytes_accessed),
        )(xs, w1, b1, w2, b2, wh, bh)

        mean = combined[:B, :out_dim]
        log_std = combined[:B, head_pad:head_pad + out_dim]
        return mean, log_std

    def forward(state):
        return _forward(state, *prepared)

    return forward


def init_params(key, input_dim, hidden_dim, output_dim, init_w=0.003):
    """Deterministic init mirroring PyTorch nn.Linear defaults + custom head init."""
    keys = jax.random.split(key, 8)

    def linear_init(kw, kb, fan_in, fan_out):
        bound = 1.0 / jnp.sqrt(jnp.float32(fan_in))
        # stored transposed: (in, out)
        w = jax.random.uniform(kw, (fan_in, fan_out), jnp.float32, -bound, bound)
        b = jax.random.uniform(kb, (fan_out,), jnp.float32, -bound, bound)
        return w, b

    w1, b1 = linear_init(keys[0], keys[1], input_dim, hidden_dim)
    w2, b2 = linear_init(keys[2], keys[3], hidden_dim, hidden_dim)
    wm = jax.random.uniform(keys[4], (hidden_dim, output_dim), jnp.float32, -init_w, init_w)
    bm = jax.random.uniform(keys[5], (output_dim,), jnp.float32, -init_w, init_w)
    ws = jax.random.uniform(keys[6], (hidden_dim, output_dim), jnp.float32, -init_w, init_w)
    bs = jax.random.uniform(keys[7], (output_dim,), jnp.float32, -init_w, init_w)

    return dict(w1=w1, b1=b1, w2=w2, b2=b2, wm=wm, bm=bm, ws=ws, bs=bs)


def reference_forward(state, p):
    x = jnp.maximum(state @ p["w1"] + p["b1"], 0.0)
    x = jnp.maximum(x @ p["w2"] + p["b2"], 0.0)
    mean = x @ p["wm"] + p["bm"]
    log_std = jnp.clip(x @ p["ws"] + p["bs"], LOG_STD_MIN, LOG_STD_MAX)
    return mean, log_std


if __name__ == "__main__":
    key = jax.random.PRNGKey(0)
    k_state, k_state2, k_params = jax.random.split(key, 3)

    batch, input_dim, hidden_dim, output_dim = 64, 16, 32, 8
    params = init_params(k_params, input_dim, hidden_dim, output_dim)
    forward = make_policy_forward(params)   # one-time weight fuse/cast

    # Even batch: 2 grid steps, no padding.
    state = jax.random.normal(k_state, (batch, input_dim), jnp.float32)
    mean, log_std = forward(state)
    jax.block_until_ready((mean, log_std))
    mean_ref, log_std_ref = reference_forward(state, params)
    assert mean.shape == (batch, output_dim) and log_std.shape == (batch, output_dim)
    assert jnp.allclose(mean, mean_ref, atol=1e-5), "mean mismatch"
    assert jnp.allclose(log_std, log_std_ref, atol=1e-5), "log_std mismatch"

    # Ragged batch: exercises the padded-tail path.
    state2 = jax.random.normal(k_state2, (13, input_dim), jnp.float32)
    mean2, log_std2 = forward(state2)
    jax.block_until_ready((mean2, log_std2))
    mean2_ref, log_std2_ref = reference_forward(state2, params)
    assert mean2.shape == (13, output_dim) and log_std2.shape == (13, output_dim)
    assert jnp.allclose(mean2, mean2_ref, atol=1e-5), "mean mismatch (ragged)"
    assert jnp.allclose(log_std2, log_std2_ref, atol=1e-5), "log_std mismatch (ragged)"

    print("KERNEL_OK")
</pallas_src>

<mosaic_0001>
module attributes {stable_mosaic.version = 11 : i64} {
  func.func @_policy_kernel(%arg0: i32, %arg1: memref<32x16xf32, #tpu.memory_space<vmem>>, %arg2: memref<16x32xf32, #tpu.memory_space<vmem>>, %arg3: memref<1x32xf32, #tpu.memory_space<vmem>>, %arg4: memref<32x32xf32, #tpu.memory_space<vmem>>, %arg5: memref<1x32xf32, #tpu.memory_space<vmem>>, %arg6: memref<32x256xf32, #tpu.memory_space<vmem>>, %arg7: memref<1x256xf32, #tpu.memory_space<vmem>>, %arg8: memref<32x256xf32, #tpu.memory_space<vmem>>) attributes {dimension_semantics = [#tpu.dimension_semantics<parallel>], iteration_bounds = array<i64: 2>, scalar_prefetch = 0 : i64, scratch_operands = 0 : i64, tpu.core_type = #tpu.core_type<tc>, window_params = [{transform_indices = @transform_0, window_bounds = array<i64: 32, 16>}, {pipeline_mode = #tpu.pipeline_mode<synchronous>, transform_indices = @transform_1, window_bounds = array<i64: 16, 32>}, {pipeline_mode = #tpu.pipeline_mode<synchronous>, transform_indices = @transform_2, window_bounds = array<i64: 1, 32>}, {pipeline_mode = #tpu.pipeline_mode<synchronous>, transform_indices = @transform_3, window_bounds = array<i64: 32, 32>}, {pipeline_mode = #tpu.pipeline_mode<synchronous>, transform_indices = @transform_4, window_bounds = array<i64: 1, 32>}, {pipeline_mode = #tpu.pipeline_mode<synchronous>, transform_indices = @transform_5, window_bounds = array<i64: 32, 256>}, {pipeline_mode = #tpu.pipeline_mode<synchronous>, transform_indices = @transform_6, window_bounds = array<i64: 1, 256>}, {transform_indices = @transform_7, window_bounds = array<i64: 32, 256>}]} {
    %c0 = arith.constant 0 : index
    %c0_0 = arith.constant 0 : index
    %0 = vector.load %arg1[%c0, %c0_0] : memref<32x16xf32, #tpu.memory_space<vmem>>, vector<32x16xf32>
    %c0_1 = arith.constant 0 : index
    %c0_2 = arith.constant 0 : index
    %1 = vector.load %arg2[%c0_1, %c0_2] : memref<16x32xf32, #tpu.memory_space<vmem>>, vector<16x32xf32>
    %cst = arith.constant dense<0.000000e+00> : vector<32x32xf32>
    %2 = tpu.matmul %0, %1, %cst {dimension_numbers = #tpu.dot_dimension_numbers<[1], [0], [0], [1], [0, 0, 1, 1], [], []>} : vector<32x16xf32>, vector<16x32xf32>, vector<32x32xf32> -> vector<32x32xf32>
    %c0_3 = arith.constant 0 : index
    %c0_4 = arith.constant 0 : index
    %3 = vector.load %arg3[%c0_3, %c0_4] : memref<1x32xf32, #tpu.memory_space<vmem>>, vector<1x32xf32>
    %4 = vector.broadcast %3 : vector<1x32xf32> to vector<32x32xf32>
    %5 = arith.addf %2, %4 : vector<32x32xf32>
    %cst_5 = arith.constant 0.000000e+00 : f32
    %6 = vector.broadcast %cst_5 : f32 to vector<32x32xf32>
    %7 = arith.maximumf %5, %6 : vector<32x32xf32>
    %c0_6 = arith.constant 0 : index
    %c0_7 = arith.constant 0 : index
    %8 = vector.load %arg4[%c0_6, %c0_7] : memref<32x32xf32, #tpu.memory_space<vmem>>, vector<32x32xf32>
    %cst_8 = arith.constant dense<0.000000e+00> : vector<32x32xf32>
    %9 = tpu.matmul %7, %8, %cst_8 {dimension_numbers = #tpu.dot_dimension_numbers<[1], [0], [0], [1], [0, 0, 1, 1], [], []>} : vector<32x32xf32>, vector<32x32xf32>, vector<32x32xf32> -> vector<32x32xf32>
    %c0_9 = arith.constant 0 : index
    %c0_10 = arith.constant 0 : index
    %10 = vector.load %arg5[%c0_9, %c0_10] : memref<1x32xf32, #tpu.memory_space<vmem>>, vector<1x32xf32>
    %11 = vector.broadcast %10 : vector<1x32xf32> to vector<32x32xf32>
    %12 = arith.addf %9, %11 : vector<32x32xf32>
    %cst_11 = arith.constant 0.000000e+00 : f32
    %13 = vector.broadcast %cst_11 : f32 to vector<32x32xf32>
    %14 = arith.maximumf %12, %13 : vector<32x32xf32>
    %c0_12 = arith.constant 0 : index
    %c0_13 = arith.constant 0 : index
    %15 = vector.load %arg6[%c0_12, %c0_13] : memref<32x256xf32, #tpu.memory_space<vmem>>, vector<32x256xf32>
    %cst_14 = arith.constant dense<0.000000e+00> : vector<32x256xf32>
    %16 = tpu.matmul %14, %15, %cst_14 {dimension_numbers = #tpu.dot_dimension_numbers<[1], [0], [0], [1], [0, 0, 1, 1], [], []>} : vector<32x32xf32>, vector<32x256xf32>, vector<32x256xf32> -> vector<32x256xf32>
    %c0_15 = arith.constant 0 : index
    %c0_16 = arith.constant 0 : index
    %17 = vector.load %arg7[%c0_15, %c0_16] : memref<1x256xf32, #tpu.memory_space<vmem>>, vector<1x256xf32>
    %18 = vector.broadcast %17 : vector<1x256xf32> to vector<32x256xf32>
    %19 = arith.addf %16, %18 : vector<32x256xf32>
    %20 = vector.extract_strided_slice %19 {offsets = [0, 0], sizes = [32, 128], strides = [1, 1]} : vector<32x256xf32> to vector<32x128xf32>
    %c0_17 = arith.constant 0 : index
    %c0_18 = arith.constant 0 : index
    %21 = vector.load %arg8[%c0_17, %c0_18] : memref<32x256xf32, #tpu.memory_space<vmem>>, vector<32x128xf32>
    tpu.vector_store %arg8[%c0_17, %c0_18], %20 {strides = array<i32>} : memref<32x256xf32, #tpu.memory_space<vmem>>, vector<32x128xf32>,
    %22 = vector.extract_strided_slice %19 {offsets = [0, 128], sizes = [32, 128], strides = [1, 1]} : vector<32x256xf32> to vector<32x128xf32>
    %cst_19 = arith.constant -2.000000e+01 : f32
    %cst_20 = arith.constant 2.000000e+00 : f32
    %23 = vector.broadcast %cst_19 : f32 to vector<32x128xf32>
    %24 = arith.maximumf %23, %22 : vector<32x128xf32>
    %25 = vector.broadcast %cst_20 : f32 to vector<32x128xf32>
    %26 = arith.minimumf %25, %24 : vector<32x128xf32>
    %c0_21 = arith.constant 0 : index
    %c128 = arith.constant 128 : index
    %27 = vector.load %arg8[%c0_21, %c128] : memref<32x256xf32, #tpu.memory_space<vmem>>, vector<32x128xf32>
    tpu.vector_store %arg8[%c0_21, %c128], %26 {strides = array<i32>} : memref<32x256xf32, #tpu.memory_space<vmem>>, vector<32x128xf32>,
    return
  }
  func.func @transform_0(%arg0: i32) -> (i32, i32) {
    %c0_i32 = arith.constant 0 : i32
    %c0_i32_0 = arith.constant 0 : i32
    return %arg0, %c0_i32 : i32, i32
  }
  func.func @transform_1(%arg0: i32) -> (i32, i32) {
    %c0_i32 = arith.constant 0 : i32
    %c0_i32_0 = arith.constant 0 : i32
    %c0_i32_1 = arith.constant 0 : i32
    return %c0_i32, %c0_i32_0 : i32, i32
  }
  func.func @transform_2(%arg0: i32) -> (i32, i32) {
    %c0_i32 = arith.constant 0 : i32
    %c0_i32_0 = arith.constant 0 : i32
    %c0_i32_1 = arith.constant 0 : i32
    return %c0_i32, %c0_i32_0 : i32, i32
  }
  func.func @transform_3(%arg0: i32) -> (i32, i32) {
    %c0_i32 = arith.constant 0 : i32
    %c0_i32_0 = arith.constant 0 : i32
    %c0_i32_1 = arith.constant 0 : i32
    return %c0_i32, %c0_i32_0 : i32, i32
  }
  func.func @transform_4(%arg0: i32) -> (i32, i32) {
    %c0_i32 = arith.constant 0 : i32
    %c0_i32_0 = arith.constant 0 : i32
    %c0_i32_1 = arith.constant 0 : i32
    return %c0_i32, %c0_i32_0 : i32, i32
  }
  func.func @transform_5(%arg0: i32) -> (i32, i32) {
    %c0_i32 = arith.constant 0 : i32
    %c0_i32_0 = arith.constant 0 : i32
    %c0_i32_1 = arith.constant 0 : i32
    return %c0_i32, %c0_i32_0 : i32, i32
  }
  func.func @transform_6(%arg0: i32) -> (i32, i32) {
    %c0_i32 = arith.constant 0 : i32
    %c0_i32_0 = arith.constant 0 : i32
    %c0_i32_1 = arith.constant 0 : i32
    return %c0_i32, %c0_i32_0 : i32, i32
  }
  func.func @transform_7(%arg0: i32) -> (i32, i32) {
    %c0_i32 = arith.constant 0 : i32
    %c0_i32_0 = arith.constant 0 : i32
    return %arg0, %c0_i32 : i32, i32
  }
}

</mosaic_0001>

<bundles_post_ra>
// kernel: _forward.1
= control target key start
LH: loop header
LB: loop body
LE: loop exit
PB: predicated region body
PF: predicated region fallthrough
CT: control target
= control target key end

     0   :  { %12 = vsyncpa [#allocation3], 0  ;;  %s1244_s0 = inlined_call_operand.vmem [shape: f32[64,16], index: 0, kind: input, shape index: {}]   ;;  %s1245_s1 = inlined_call_operand.hbm [shape: f32[16,32], index: 1, kind: input, shape index: {}]   ;;  %s1246_s2 = inlined_call_operand.hbm [shape: f32[1,32], index: 2, kind: input, shape index: {}]   ;;  %s1247_s3 = inlined_call_operand.vmem [shape: f32[32,32], index: 3, kind: input, shape index: {}]   ;;  %s1248_s4 = inlined_call_operand.hbm [shape: f32[1,32], index: 4, kind: input, shape index: {}]   ;;  %s1249_s5 = inlined_call_operand.vmem [shape: f32[32,256], index: 5, kind: input, shape index: {}]   ;;  %s1250_s6 = inlined_call_operand.vmem [shape: f32[1,256], index: 6, kind: input, shape index: {}]   ;;  %s1251_s7 = inlined_call_operand.vmem [shape: f32[64,256], index: 7, kind: output, shape index: {}]  }
   0x1   :  { %13 = vsyncpa [#allocation5], 0  ;;  %s1057_s24 = smov 0  }
   0x2 LB: > { %s1011_s25 = smov [#allocation4]   ;;  %s778_s27 = sadd.s32 4294967295, %s1009_s24   ;;  %s1009_s24 = sphi %s1057_s24, %s19_s24  }
   0x3   : > { %s228_s26 = sshll.u32 %s1011_s25, 4  ;;  %p780_p0 = scmp.ge.s32.totalorder %s1009_s24, 1  ;;  %s229_s26 = int_to_ptr.vmem [resolvable:$true] %s228_s26 }
   0x4   : > { %p202_p1 = scmp.lt.s32.totalorder %s1009_s24, 3  ;;  %p1067_p2 = scmp.eq.s32.totalorder %s778_s27, 0 }
   0x5   : > { %s1012_s30 = smov [#allocation2]   ;;  %s1013_s10 = smov [#allocation6]  }
   0x6   : > { %s1255_s28 = scalar_select %p1067_p2, 1, 0 }
   0x7   : > { %p1071_p3 = pnand %p780_p0, %p202_p1  ;;  %s214_s8 = sshll.u32 %s1012_s30, 4  ;;  %s1083_s8 = int_to_ptr.vmem [resolvable:$true] %s214_s8 }
   0x8   : > { %s242_s11 = sshll.u32 %s1013_s10, 4  ;;  %s911_s14 = scalar_lea.hbm %s1246_s2, 16  ;;  %s1085_s11 = int_to_ptr.vmem [resolvable:$true] %s242_s11 }
   0x9   : > { %s1256_s29 = scalar_select %p1071_p3, 1, 0 }
   0xa   : > { %p881_p4 = pneg %p1071_p3  ;;  %p912_p6 = scmp.ne.s32.totalorder %s1246_s2, %s911_s14 }
   0xb   : > { %p918_p10 = scmp.lt.u32.totalorder %s911_s14, %s1246_s2 }
   0xc   : > { %p1079_p5 = pnand %p1067_p2, %p881_p4 }
   0xe   : > { %p1095_p7 = pneg %p1079_p5 }
  0x10   : > { %p914_p8 = pnand %p1095_p7, %p912_p6 }
  0x12   : > { %p915_p9 = pneg %p914_p8 }
  0x14   : > { %p920_p11 = pnand %p918_p10, %p915_p9 }
  0x16   : > { %923 = shalt.err (!%p920_p11)
}
  0x17   : > { %s924_s20 = scalar_lea.vmem %s229_s26, 16  ;;  %s931_s21 = scalar_lea.vmem %s229_s26, 32 }
  0x18   : > { %p925_p12 = scmp.ne.s32.totalorder %s229_s26, %s924_s20  ;;  %p932_p1 = scmp.lt.s32.totalorder %s229_s26, %s229_s26 }
  0x19   : > { %p933_p4 = scmp.lt.s32.totalorder %s931_s21, %s924_s20 }
  0x1a   : > { %p927_p13 = pnand %p925_p12, %p1095_p7 }
  0x1b   : > { %p934_p2 = por %p933_p4, %p932_p1 }
  0x1c   : > { %p928_p0 = pneg %p927_p13 }
  0x1e   : > { %p935_p3 = pnand %p934_p2, %p928_p0 }
  0x20   : > { %938 = shalt.err (!%p935_p3)
}
  0x21   : > { %887 = dma.hbm_to_vmem [thread:$0]  (!%p1079_p5), %s1246_s2, 16, %s229_s26, [#allocation5]  }
  0x22   : > { %s939_s10 = scalar_lea.hbm %s1245_s1, 256 }
  0x23   : > { %p940_p6 = scmp.ne.s32.totalorder %s1245_s1, %s939_s10  ;;  %p946_p2 = scmp.lt.u32.totalorder %s939_s10, %s1245_s1 }
  0x25   : > { %p942_p8 = pnand %p940_p6, %p1095_p7 }
  0x27   : > { %p943_p9 = pneg %p942_p8 }
  0x29   : > { %p948_p3 = pnand %p946_p2, %p943_p9 }
  0x2b   : > { %951 = shalt.err (!%p948_p3)
}
  0x2c   : > { %s952_s26 = scalar_lea.vmem %s1083_s8, 256  ;;  %p960_p13 = scmp.lt.s32.totalorder %s1083_s8, %s1083_s8 }
  0x2d   : > { %p953_p10 = scmp.ne.s32.totalorder %s1083_s8, %s952_s26  ;;  %p961_p0 = scmp.lt.s32.totalorder %s952_s26, %s952_s26 }
  0x2f   : > { %p955_p11 = pnand %p953_p10, %p1095_p7  ;;  %p962_p1 = por %p961_p0, %p960_p13 }
  0x31   : > { %p956_p12 = pneg %p955_p11 }
  0x33   : > { %p963_p4 = pnand %p962_p1, %p956_p12 }
  0x35   : > { %966 = shalt.err (!%p963_p4)
}
  0x36   : > { %s1014_s16 = smov 128   ;;  %s1015_s18 = smov 8  }
  0x37   : > { %884 = dma.hbm_to_vmem [thread:$0]  (!%p1079_p5), %s1245_s1, 256, %s1083_s8, [#allocation3], %s1014_s16, %s1014_s16, %s1015_s18  }
  0x38   : > { %s967_s23 = scalar_lea.hbm %s1248_s4, 16 }
  0x39   : > { %p968_p6 = scmp.ne.s32.totalorder %s1248_s4, %s967_s23  ;;  %p974_p2 = scmp.lt.u32.totalorder %s967_s23, %s1248_s4 }
  0x3b   : > { %p970_p8 = pnand %p968_p6, %p1095_p7 }
  0x3d   : > { %p971_p9 = pneg %p970_p8 }
  0x3f   : > { %p976_p3 = pnand %p974_p2, %p971_p9 }
  0x41   : > { %979 = shalt.err (!%p976_p3)
}
  0x42   : > { %s980_s8 = scalar_lea.vmem %s1085_s11, 16  ;;  %s987_s13 = scalar_lea.vmem %s1085_s11, 32 }
  0x43   : > { %p981_p10 = scmp.ne.s32.totalorder %s1085_s11, %s980_s8  ;;  %p988_p13 = scmp.lt.s32.totalorder %s1085_s11, %s1085_s11 }
  0x44   : > { %p989_p0 = scmp.lt.s32.totalorder %s987_s13, %s980_s8 }
  0x45   : > { %p983_p11 = pnand %p981_p10, %p1095_p7 }
  0x46   : > { %p990_p1 = por %p989_p0, %p988_p13 }
  0x47   : > { %p984_p12 = pneg %p983_p11 }
  0x49   : > { %p991_p4 = pnand %p990_p1, %p984_p12 }
  0x4b   : > { %994 = shalt.err (!%p991_p4)
}
  0x4c   : > { %890 = dma.hbm_to_vmem [thread:$0]  (!%p1079_p5), %s1248_s4, 16, %s1085_s11, [#allocation5]  }
  0x4d   : > { %p1259_p6 = scmp.ne.s32.totalorder %s1256_s29, 0 }
  0x4e   : > { %p1260_p7 = scmp.ne.s32.totalorder (!%p1259_p6), %s1255_s28, 0 }
  0x4f   : > { %270 = sbr.rel (%p1259_p6) target bundleno = 764 (0x2fc), region = 48 }
  0x56   : > { %1000 = dma.done.wait (%p1260_p7), [#allocation3], 256  }
  0x57   : > { %1002 = vsyncadd (%p1260_p7), [#allocation3], 4294967040 }
  0x58   : > { %1004 = dma.done.wait (%p1260_p7), [#allocation5], 32  }
  0x59   : > { %1006 = vsyncadd (%p1260_p7), [#allocation5], 4294967264  ;;  %s789_s9 = sshll.u32 %s778_s27, 2  ;;  %vm337_vm0 = vcmask 130048   ;;  %v328_v0 = vld [vmem:[#allocation2] sm:$0xff]  ;;  %v329_v1 = vld [vmem:[#allocation2 + $0x8] sm:$0xff]  ;;  %v562_v52 = vlaneseq }
  0x5a   : > { %p312_p8 = scmp.lt.s32.totalorder %s789_s9, 7  ;;  %v849_v3 = vpack.c.bf16 %v329_v1, %v328_v0  ;;  %v439_v4 = vld [vmem:[%s1247_s3] sm:$0xff]  ;;  %v440_v5 = vld [vmem:[%s1247_s3 + $0x8] sm:$0xff]  ;;  %v441_v10 = vld [vmem:[%s1247_s3 + $0x10] sm:$0xff]  ;;  %vm450_vm1 = vcmask 261120   ;;  %v1016_v38 = vmov 0.0  }
  0x5b   : > { %v853_v6 = vpack.c.bf16 %v440_v5, %v439_v4  ;;  %v442_v11 = vld [vmem:[%s1247_s3 + $0x18] sm:$0xff]  ;;  %v553_v13 = vld [vmem:[%s1249_s5 + $0x8] sm:$0xff]  ;;  %v552_v15 = vld [vmem:[%s1249_s5] sm:$0xff]  ;;  %648 = vmatprep.mubr.f32.mxu0 %v1016_v38  ;;  %v563_v53 = vshrl.u32 %v562_v52, 7 }
  0x5c   : > { %s1262_s9 = smov (!%p312_p8, %s789_s9), 7  ;;  %850 = vmatprep.subr.bf16.mxu1 %v849_v3  ;;  %v857_v12 = vpack.c.bf16 %v442_v11, %v441_v10  ;;  %v555_v14 = vld [vmem:[%s1249_s5 + $0x18] sm:$0xff]  ;;  %v554_v17 = vld [vmem:[%s1249_s5 + $0x10] sm:$0xff]  ;;  %v557_v32 = vld [vmem:[%s1249_s5 + $0x28] sm:$0xff] }
  0x5d   : > { %s790_s29 = sshll.u32 %s1262_s9, 3  ;;  %852 = vmatpush3.bf16.msra.mxu1 %v849_v3  ;;  %v861_v16 = vpack.c.bf16 %v555_v14, %v553_v13  ;;  %v863_v18 = vpack.c.bf16 %v554_v17, %v552_v15  ;;  %v794_v19 = vld [vmem:[#allocation4] ss:$0 sm:$0xff]  ;;  %v559_v33 = vld [vmem:[%s1249_s5 + $0x38] sm:$0xff]  ;;  %v556_v35 = vld [vmem:[%s1249_s5 + $0x20] sm:$0xff]  ;;  %v564_v54 = vsub.s32 0, %v563_v53 }
  0x5e   : > { %s315_s26 = scalar_lea.vmem %s1244_s0, %s790_s29  ;;  %854 = vmatprep.subr.bf16.mxu1 %v853_v6  ;;  %v865_v34 = vpack.c.bf16 %v559_v33, %v557_v32  ;;  %v558_v36 = vld [vmem:[%s1249_s5 + $0x30] sm:$0xff]  ;;  %v560_v55 = vld [vmem:[%s1250_s6] sm:$0x3]  ;;  %v568_v56 = vsub.s32 1, %v563_v53  ;;  %s810_s20 = sshll.u32 %s1262_s9, 4 }
  0x5f   : > { %v324_v2 = vld [vmem:[%s315_s26] sm:$0xff]  ;;  %v325_v7 = vld [vmem:[%s315_s26 + $0x8] sm:$0xff]  ;;  %v326_v8 = vld [vmem:[%s315_s26 + $0x10] sm:$0xff]  ;;  %862 = vmatprep.subr.bf16.mxu0 %v861_v16  ;;  %v867_v37 = vpack.c.bf16 %v558_v36, %v556_v35  ;;  %v565_v57 = vrot.slane %v560_v55, %v564_v54  ;;  %s1231_s23 = scalar_lea.vmem %s1251_s7, %s810_s20 }
  0x60   : > { %829 = vmatprep.mubr.msk.f32.mxu1 %vm337_vm0, %v324_v2  ;;  %v327_v9 = vld [vmem:[%s315_s26 + $0x18] sm:$0xff]  ;;  %864 = vmatpush1.bf16.msra.mxu0 %v863_v18  ;;  %v799_v39 = vld [vmem:[#allocation6] ss:$0 sm:$0xff]  ;;  %v569_v58 = vrot.slane %v560_v55, %v568_v56 }
  0x61   : > { %830 = vmatmul.mubr.msk.f32.vlgmr.msra.gmra.mrb[0].mxu1 %vm337_vm0, %v325_v7  ;;  %866 = vmatprep.subr.bf16.mxu0 %v865_v34 }
  0x62   : > { %832 = vmatprep.mubr.msk.f32.mxu1 %vm337_vm0, %v326_v8  ;;  %856 = vmatpush3.bf16.msra.mxu1 %v853_v6 }
  0x63   : > { %858 = vmatprep.subr.bf16.mxu1 %v857_v12 }
  0x64   : > { %868 = vmatpush1.bf16.msra.mxu0 %v867_v37 }
  0x65   : > { %833 = vmatmul.mubr.msk.f32.gmra.mrb[2].mxu1 %vm337_vm0, %v327_v9 }
  0x66   : > { %860 = vmatpush3.bf16.msra.mxu1 %v857_v12 }
 0x134   : > { %v831_v20 = vpop.f32.mrb[0].mxu1 }
 0x135   : > { %v422_v21 = vadd.f32 %v831_v20, %v794_v19  ;;  %v416_v22 = vpop.f32.mrb[1].mxu1 }
 0x136   : > { %v417_v23 = vadd.f32 %v794_v19, %v416_v22 }
 0x137   : > { %v436_v26 = vmax.f32 %v422_v21, 0.0 }
 0x138   : > { %v435_v24 = vmax.f32 %v417_v23, 0.0  ;;  %v834_v25 = vpop.f32.mrb[2].mxu1 }
 0x139   : > { %v432_v27 = vadd.f32 %v834_v25, %v794_v19  ;;  %v426_v28 = vpop.f32.mrb[3].mxu1 }
 0x13a   : > { %v427_v29 = vadd.f32 %v794_v19, %v426_v28  ;;  %843 = vmatprep.mubr.msk.f32.mxu1 %vm450_vm1, %v435_v24 }
 0x13b   : > { %v438_v30 = vmax.f32 %v432_v27, 0.0  ;;  %844 = vmatmul.mubr.msk.f32.vlgmr.msra.gmra.mrb[4].mxu1 %vm450_vm1, %v436_v26 }
 0x13c   : > { %v437_v31 = vmax.f32 %v427_v29, 0.0 }
 0x13e   : > { %846 = vmatprep.mubr.msk.f32.mxu1 %vm450_vm1, %v437_v31 }
 0x13f   : > { %847 = vmatmul.mubr.msk.f32.gmra.mrb[6].mxu1 %vm450_vm1, %v438_v30 }
 0x20e   : > { %v845_v40 = vpop.f32.mrb[4].mxu1 }
 0x20f   : > { %v529_v41 = vpop.f32.mrb[5].mxu1  ;;  %v535_v43 = vadd.f32 %v845_v40, %v799_v39 }
 0x210   : > { %v530_v42 = vadd.f32 %v799_v39, %v529_v41 }
 0x211   : > { %v549_v47 = vmax.f32 %v535_v43, 0.0 }
 0x212   : > { %v548_v44 = vmax.f32 %v530_v42, 0.0  ;;  %v848_v45 = vpop.f32.mrb[6].mxu1 }
 0x213   : > { %v539_v46 = vpop.f32.mrb[7].mxu1  ;;  %v545_v49 = vadd.f32 %v848_v45, %v799_v39 }
 0x214   : > { %804 = vmatmul.mubr.msk.f32.vlgmr.msra.gmra.mrb[0].mxu0 %vm450_vm1, %v548_v44  ;;  %v540_v48 = vadd.f32 %v799_v39, %v539_v46 }
 0x215   : > { %654 = vmatprep.mubr.f32.mxu0 %v1016_v38  ;;  %v551_v51 = vmax.f32 %v545_v49, 0.0 }
 0x216   : > { %v550_v50 = vmax.f32 %v540_v48, 0.0 }
 0x218   : > { %805 = vmatmul.mubr.msk.f32.gmra.mrb[2].mxu0 %vm450_vm1, %v549_v47 }
 0x219   : > { %660 = vmatprep.mubr.f32.mxu0 %v1016_v38 }
 0x21c   : > { %806 = vmatmul.mubr.msk.f32.gmra.mrb[4].mxu0 %vm450_vm1, %v550_v50 }
 0x21d   : > { %666 = vmatprep.mubr.f32.mxu0 %v1016_v38 }
 0x220   : > { %807 = vmatmul.mubr.msk.f32.gmra.mrb[6].mxu0 %vm450_vm1, %v551_v51 }
 0x2e7   : > { %v650_v59 = vpop.f32.mrb[0].mxu0 }
 0x2e8   : > { %v651_v60 = vadd.f32 %v650_v59, %v565_v57  ;;  %v652_v61 = vpop.f32.mrb[1].mxu0 }
 0x2e9   : > { %v653_v62 = vadd.f32 %v652_v61, %v569_v58 }
 0x2ea   : > { %673 = vst [vmem:[%s1231_s23] sm:$0xff] %v651_v60 }
 0x2eb   : > { %v677_v63 = vmax.f32 %v653_v62, -20.0  ;;  %v656_v0 = vpop.f32.mrb[2].mxu0 }
 0x2ec   : > { %v657_v1 = vadd.f32 %v656_v0, %v565_v57  ;;  %v658_v2 = vpop.f32.mrb[3].mxu0 }
 0x2ed   : > { %v681_v3 = vmin.f32 %v677_v63, 2.0  ;;  %v659_v4 = vadd.f32 %v658_v2, %v569_v58 }
 0x2ee   : > { %674 = vst [vmem:[%s1231_s23 + $0x10] sm:$0xff] %v657_v1 }
 0x2ef   : > { %685 = vst [vmem:[%s1231_s23 + $0x8] sm:$0xff] %v681_v3  ;;  %v678_v5 = vmax.f32 %v659_v4, -20.0  ;;  %v662_v6 = vpop.f32.mrb[4].mxu0 }
 0x2f0   : > { %v663_v7 = vadd.f32 %v662_v6, %v565_v57  ;;  %v664_v8 = vpop.f32.mrb[5].mxu0 }
 0x2f1   : > { %v682_v9 = vmin.f32 %v678_v5, 2.0  ;;  %v665_v10 = vadd.f32 %v664_v8, %v569_v58 }
 0x2f2   : > { %675 = vst [vmem:[%s1231_s23 + $0x20] sm:$0xff] %v663_v7 }
 0x2f3   : > { %686 = vst [vmem:[%s1231_s23 + $0x18] sm:$0xff] %v682_v9  ;;  %v679_v11 = vmax.f32 %v665_v10, -20.0  ;;  %v668_v12 = vpop.f32.mrb[6].mxu0 }
 0x2f4   : > { %v669_v13 = vadd.f32 %v668_v12, %v565_v57  ;;  %v670_v14 = vpop.f32.mrb[7].mxu0 }
 0x2f5   : > { %v683_v15 = vmin.f32 %v679_v11, 2.0  ;;  %v671_v16 = vadd.f32 %v670_v14, %v569_v58 }
 0x2f6   : > { %676 = vst [vmem:[%s1231_s23 + $0x30] sm:$0xff] %v669_v13 }
 0x2f7   : > { %687 = vst [vmem:[%s1231_s23 + $0x28] sm:$0xff] %v683_v15  ;;  %v680_v17 = vmax.f32 %v671_v16, -20.0 }
 0x2f9   : > { %v684_v18 = vmin.f32 %v680_v17, 2.0 }
 0x2fb   : > { %688 = vst [vmem:[%s1231_s23 + $0x38] sm:$0xff] %v684_v18 }
 0x2fc PF: > { %s19_s24 = sadd.s32 1, %s1009_s24  }
 0x2fd   : > { %p16_p5 = scmp.ge.s32.totalorder %s19_s24, 4  }
 0x2ff   :  { %18 = sbr.rel (!%p16_p5) target bundleno = 2 (0x2), region = 91 }
 0x306   :  { %713 = vsyncpa [#allocation3], 1 }
 0x307   :  { %715 = vsyncpa [#allocation3 + $0x1], 1 }
 0x308   :  { %716 = vsyncpa [#allocation5], 1 }

</bundles_post_ra>
